<compile_context>
chip_gen: v6e
topology: v6e:2x2x1
jax: 0.10.0
libtpu: 0.0.40
codegen_flags: <defaults>
</compile_context>

<pallas_src>
from functools import partial

import jax
import jax.numpy as jnp
from jax.experimental import pallas as pl
from jax.experimental.pallas import tpu as pltpu


# --------------------------------------------------------------------------- #
# Kernel
# --------------------------------------------------------------------------- #
def _encoder_kernel(x_ref, w1_ref, b1_ref, w2_ref, b2_ref, wh_ref, bh_ref,
                    mu_ref, lv_ref, acc_ref):
    k = pl.program_id(1)

    @pl.when(k == 0)
    def _init():
        acc_ref[...] = jnp.zeros_like(acc_ref)

    # K-tiled first matmul: acc += x_tile @ W1_tile (bf16 operands, f32 acc).
    # x arrives in f32 and is cast on the VPU (free under the HBM-bound regime).
    acc_ref[...] += jnp.dot(x_ref[...].astype(jnp.bfloat16), w1_ref[...],
                            preferred_element_type=jnp.float32)

    @pl.when(k == pl.num_programs(1) - 1)
    def _finalize():
        # Layer 1 epilogue: bias + tanh (f32).
        h = jnp.tanh(acc_ref[...] + b1_ref[...])
        # Hidden layer: Linear(hidden -> hidden) + tanh.
        h = jnp.dot(h.astype(w2_ref.dtype), w2_ref[...],
                    preferred_element_type=jnp.float32)
        h = jnp.tanh(h + b2_ref[...])
        # Fused mu/logvar heads: one N = 2*latent matmul on the MXU, then the
        # two halves are stored to separate (lane-dense) outputs.
        out = jnp.dot(h.astype(wh_ref.dtype), wh_ref[...],
                      preferred_element_type=jnp.float32) + bh_ref[...]
        latent = mu_ref.shape[-1]
        mu_ref[...] = out[:, :latent].astype(mu_ref.dtype)
        lv_ref[...] = out[:, latent:].astype(lv_ref.dtype)


# --------------------------------------------------------------------------- #
# Setup (one-time): bf16 weights, fused heads, K-padded W1.
# --------------------------------------------------------------------------- #
def prepare_encoder_params(w1, b1, w2, b2, wmu, bmu, wlv, blv,
                           *, k_pad_multiple=256):
    """Hoists weight casts / concats / padding out of the per-call path.

    Weights are stored [in, out]; biases may be [out] or [1, out].
    """
    item_dim, hidden = w1.shape
    latent = wmu.shape[1]
    k_padded = -(-item_dim // k_pad_multiple) * k_pad_multiple

    w1_bf = w1.astype(jnp.bfloat16)
    if k_padded != item_dim:
        # Zero rows contribute nothing to x @ W1 regardless of x padding.
        w1_bf = jnp.pad(w1_bf, ((0, k_padded - item_dim), (0, 0)))

    params = {
        "item_dim": item_dim,
        "k_padded": k_padded,
        "hidden": hidden,
        "latent": latent,
        "w1": w1_bf,
        "b1": jnp.asarray(b1).reshape(1, hidden).astype(jnp.float32),
        "w2": w2.astype(jnp.bfloat16),
        "b2": jnp.asarray(b2).reshape(1, hidden).astype(jnp.float32),
        "wh": jnp.concatenate([wmu, wlv], axis=1).astype(jnp.bfloat16),
        "bh": jnp.concatenate(
            [jnp.asarray(bmu).reshape(1, latent),
             jnp.asarray(blv).reshape(1, latent)], axis=1).astype(jnp.float32),
    }
    return params


# --------------------------------------------------------------------------- #
# Tile selection under an explicit VMEM budget.
# --------------------------------------------------------------------------- #
def _vmem_bytes(tb, tk, hidden, latent):
    x_tiles = 2 * tb * tk * 4              # f32 x tile, double buffered
    w1_tiles = 2 * tk * hidden * 2         # bf16 W1 K-slices, double buffered
    w2_res = 2 * hidden * hidden * 2       # resident (constant index_map)
    wh_res = 2 * hidden * (2 * latent) * 2
    biases = 2 * (2 * hidden + 2 * latent) * 4
    outs = 2 * 2 * tb * latent * 4         # two f32 outputs, double buffered
    acc = tb * hidden * 4                  # f32 accumulator scratch
    return x_tiles + w1_tiles + w2_res + wh_res + biases + outs + acc


def _pick_tiles(batch, k_padded, hidden, latent, prefer_batch_tiles):
    max_tb = batch
    if prefer_batch_tiles > 1 and batch % prefer_batch_tiles == 0:
        max_tb = batch // prefer_batch_tiles    # e.g. 2 tiles -> both v7x TCs

    tb_cands = [c for c in (1024, 512, 256, 128, 64, 32, 16, 8)
                if c <= max_tb and batch % c == 0]
    if not tb_cands:
        tb_cands = [batch]                       # full-extent batch block (legal)
    tk_cands = [c for c in (2048, 1024, 512, 256) if k_padded % c == 0]

    budget = 44 * 1024 * 1024                    # safe on v7x's 64 MiB VMEM
    tb, tk = tb_cands[-1], tk_cands[-1]
    for tb_try in tb_cands:                      # prefer big tb (W1 read once)
        for tk_try in tk_cands:                  # then big tk (fewer grid steps)
            if _vmem_bytes(tb_try, tk_try, hidden, latent) <= budget:
                return tb_try, tk_try
    return tb, tk


# --------------------------------------------------------------------------- #
# Per-call wrapper
# --------------------------------------------------------------------------- #
@partial(jax.jit,
         static_argnames=("tb", "tk", "k_padded", "latent", "vmem_limit"))
def _encoder_pallas(x, w1, b1, w2, b2, wh, bh,
                    *, tb, tk, k_padded, latent, vmem_limit):
    batch, item_dim = x.shape
    hidden = w1.shape[1]
    if item_dim != k_padded:
        x = jnp.pad(x, ((0, 0), (0, k_padded - item_dim)))

    grid = (batch // tb, k_padded // tk)

    mu, lv = pl.pallas_call(
        _encoder_kernel,
        out_shape=(jax.ShapeDtypeStruct((batch, latent), jnp.float32),
                   jax.ShapeDtypeStruct((batch, latent), jnp.float32)),
        grid_spec=pltpu.PrefetchScalarGridSpec(
            num_scalar_prefetch=0,
            grid=grid,
            in_specs=[
                pl.BlockSpec((tb, tk), lambda i, k: (i, k)),              # x (streamed, f32)
                pl.BlockSpec((tk, hidden), lambda i, k: (k, 0)),          # W1 K-slices (streamed)
                pl.BlockSpec((1, hidden), lambda i, k: (0, 0)),           # b1 (resident)
                pl.BlockSpec((hidden, hidden), lambda i, k: (0, 0)),      # W2 (resident)
                pl.BlockSpec((1, hidden), lambda i, k: (0, 0)),           # b2 (resident)
                pl.BlockSpec((hidden, 2 * latent), lambda i, k: (0, 0)),  # [Wmu|Wlv] (resident)
                pl.BlockSpec((1, 2 * latent), lambda i, k: (0, 0)),       # [bmu|blv] (resident)
            ],
            out_specs=[
                pl.BlockSpec((tb, latent), lambda i, k: (i, 0)),          # mu
                pl.BlockSpec((tb, latent), lambda i, k: (i, 0)),          # logvar
            ],
            scratch_shapes=[pltpu.VMEM((tb, hidden), jnp.float32)],
        ),
        compiler_params=pltpu.CompilerParams(
            dimension_semantics=("parallel", "arbitrary"),
            vmem_limit_bytes=vmem_limit,
        ),
    )(x, w1, b1, w2, b2, wh, bh)
    return mu, lv


def multvae_encoder(x, params, *, prefer_batch_tiles=1):
    """MultVAE encoder forward.  Set prefer_batch_tiles=2 on v7x (2 TCs)."""
    batch = x.shape[0]
    hidden = params["hidden"]
    latent = params["latent"]
    k_padded = params["k_padded"]

    tb, tk = _pick_tiles(batch, k_padded, hidden, latent, prefer_batch_tiles)
    est = _vmem_bytes(tb, tk, hidden, latent)
    # Raise the scoped VMEM limit (v5e default is 16 MiB) but stay well under
    # v7x's 64 MiB physical VMEM.
    vmem_limit = int(min(max(est + (8 << 20), 32 << 20), 56 << 20))

    return _encoder_pallas(
        x, params["w1"], params["b1"], params["w2"], params["b2"],
        params["wh"], params["bh"],
        tb=tb, tk=tk, k_padded=k_padded, latent=latent, vmem_limit=vmem_limit)


# --------------------------------------------------------------------------- #
# Test
# --------------------------------------------------------------------------- #
def _init_linear(key, fan_in, fan_out):
    # Mimics PyTorch's default uniform(-1/sqrt(fan_in), 1/sqrt(fan_in)).
    kw, kb = jax.random.split(key)
    bound = 1.0 / jnp.sqrt(fan_in)
    # Stored [in, out] (transposed vs PyTorch [out, in]) so the kernel does x @ W.
    w = jax.random.uniform(kw, (fan_in, fan_out), jnp.float32, -bound, bound)
    b = jax.random.uniform(kb, (1, fan_out), jnp.float32, -bound, bound)
    return w, b


if __name__ == "__main__":
    # Small, tile-friendly-ish shapes consistent with the module's forward.
    # item_dim deliberately NOT a 256-multiple: exercises the K-padding path
    # and a 2-step K grid (k_padded = 4096, tk = 2048).
    batch = 16
    item_dim = 4000
    hidden_dim = 128
    latent_dim = 128

    key = jax.random.PRNGKey(0)
    kx, k1, k2, kmu, klv = jax.random.split(key, 5)

    x = jax.random.normal(kx, (batch, item_dim), jnp.float32)
    w1, b1 = _init_linear(k1, item_dim, hidden_dim)
    w2, b2 = _init_linear(k2, hidden_dim, hidden_dim)
    wmu, bmu = _init_linear(kmu, hidden_dim, latent_dim)
    wlv, blv = _init_linear(klv, hidden_dim, latent_dim)

    # One-time setup (weight casts / head fusion / K padding hoisted here).
    params = prepare_encoder_params(w1, b1, w2, b2, wmu, bmu, wlv, blv)

    mu, logvar = multvae_encoder(x, params)
    jax.block_until_ready((mu, logvar))

    # Pure-JAX reference mimicking the kernel's bf16 MXU operand rounding.
    def _bf(a):
        return a.astype(jnp.bfloat16).astype(jnp.float32)

    h_ref = jnp.tanh(_bf(x) @ _bf(w1) + b1)
    h_ref = jnp.tanh(_bf(h_ref) @ _bf(w2) + b2)
    mu_ref = _bf(h_ref) @ _bf(wmu) + bmu
    lv_ref = _bf(h_ref) @ _bf(wlv) + blv

    assert mu.shape == (batch, latent_dim) and logvar.shape == (batch, latent_dim)
    assert jnp.allclose(mu, mu_ref, atol=2e-3, rtol=2e-3)
    assert jnp.allclose(logvar, lv_ref, atol=2e-3, rtol=2e-3)

    print("KERNEL_OK")
</pallas_src>

<mosaic_0001>
module attributes {stable_mosaic.version = 11 : i64} {
  func.func @_encoder_kernel(%arg0: i32, %arg1: i32, %arg2: memref<16x2048xf32, #tpu.memory_space<vmem>>, %arg3: memref<2048x128xbf16, #tpu.memory_space<vmem>>, %arg4: memref<1x128xf32, #tpu.memory_space<vmem>>, %arg5: memref<128x128xbf16, #tpu.memory_space<vmem>>, %arg6: memref<1x128xf32, #tpu.memory_space<vmem>>, %arg7: memref<128x256xbf16, #tpu.memory_space<vmem>>, %arg8: memref<1x256xf32, #tpu.memory_space<vmem>>, %arg9: memref<16x128xf32, #tpu.memory_space<vmem>>, %arg10: memref<16x128xf32, #tpu.memory_space<vmem>>, %arg11: memref<16x128xf32, #tpu.memory_space<vmem>>) attributes {dimension_semantics = [#tpu.dimension_semantics<parallel>, #tpu.dimension_semantics<arbitrary>], iteration_bounds = array<i64: 1, 2>, scalar_prefetch = 0 : i64, scratch_operands = 1 : i64, tpu.core_type = #tpu.core_type<tc>, window_params = [{transform_indices = @transform_0, window_bounds = array<i64: 16, 2048>}, {transform_indices = @transform_1, window_bounds = array<i64: 2048, 128>}, {pipeline_mode = #tpu.pipeline_mode<synchronous>, transform_indices = @transform_2, window_bounds = array<i64: 1, 128>}, {pipeline_mode = #tpu.pipeline_mode<synchronous>, transform_indices = @transform_3, window_bounds = array<i64: 128, 128>}, {pipeline_mode = #tpu.pipeline_mode<synchronous>, transform_indices = @transform_4, window_bounds = array<i64: 1, 128>}, {pipeline_mode = #tpu.pipeline_mode<synchronous>, transform_indices = @transform_5, window_bounds = array<i64: 128, 256>}, {pipeline_mode = #tpu.pipeline_mode<synchronous>, transform_indices = @transform_6, window_bounds = array<i64: 1, 256>}, {transform_indices = @transform_7, window_bounds = array<i64: 16, 128>}, {transform_indices = @transform_8, window_bounds = array<i64: 16, 128>}]} {
    %c0_i32 = arith.constant 0 : i32
    %0 = arith.cmpi eq, %arg1, %c0_i32 : i32
    %1 = arith.extui %0 : i1 to i32
    %c0_i32_0 = arith.constant 0 : i32
    %2 = arith.cmpi ne, %1, %c0_i32_0 : i32
    scf.if %2 {
      %cst_9 = arith.constant 0.000000e+00 : f32
      %13 = vector.broadcast %cst_9 : f32 to vector<16x128xf32>
      %c0_10 = arith.constant 0 : index
      %c0_11 = arith.constant 0 : index
      %14 = vector.load %arg11[%c0_10, %c0_11] : memref<16x128xf32, #tpu.memory_space<vmem>>, vector<16x128xf32>
      tpu.vector_store %arg11[%c0_10, %c0_11], %13 {strides = array<i32>} : memref<16x128xf32, #tpu.memory_space<vmem>>, vector<16x128xf32>,
    } else {
    }
    %c0 = arith.constant 0 : index
    %c0_1 = arith.constant 0 : index
    %3 = vector.load %arg11[%c0, %c0_1] : memref<16x128xf32, #tpu.memory_space<vmem>>, vector<16x128xf32>
    %c0_2 = arith.constant 0 : index
    %c0_3 = arith.constant 0 : index
    %4 = vector.load %arg2[%c0_2, %c0_3] : memref<16x2048xf32, #tpu.memory_space<vmem>>, vector<16x2048xf32>
    %5 = arith.truncf %4 : vector<16x2048xf32> to vector<16x2048xbf16>
    %c0_4 = arith.constant 0 : index
    %c0_5 = arith.constant 0 : index
    %6 = vector.load %arg3[%c0_4, %c0_5] : memref<2048x128xbf16, #tpu.memory_space<vmem>>, vector<2048x128xbf16>
    %cst = arith.constant dense<0.000000e+00> : vector<16x128xf32>
    %7 = tpu.matmul %5, %6, %cst {dimension_numbers = #tpu.dot_dimension_numbers<[1], [0], [0], [1], [0, 0, 1, 1], [], []>} : vector<16x2048xbf16>, vector<2048x128xbf16>, vector<16x128xf32> -> vector<16x128xf32>
    %8 = arith.addf %3, %7 : vector<16x128xf32>
    %c0_6 = arith.constant 0 : index
    %c0_7 = arith.constant 0 : index
    %9 = vector.load %arg11[%c0_6, %c0_7] : memref<16x128xf32, #tpu.memory_space<vmem>>, vector<16x128xf32>
    tpu.vector_store %arg11[%c0_6, %c0_7], %8 {strides = array<i32>} : memref<16x128xf32, #tpu.memory_space<vmem>>, vector<16x128xf32>,
    %c1_i32 = arith.constant 1 : i32
    %10 = arith.cmpi eq, %arg1, %c1_i32 : i32
    %11 = arith.extui %10 : i1 to i32
    %c0_i32_8 = arith.constant 0 : i32
    %12 = arith.cmpi ne, %11, %c0_i32_8 : i32
    scf.if %12 {
      %c0_9 = arith.constant 0 : index
      %c0_10 = arith.constant 0 : index
      %13 = vector.load %arg11[%c0_9, %c0_10] : memref<16x128xf32, #tpu.memory_space<vmem>>, vector<16x128xf32>
      %c0_11 = arith.constant 0 : index
      %c0_12 = arith.constant 0 : index
      %14 = vector.load %arg4[%c0_11, %c0_12] : memref<1x128xf32, #tpu.memory_space<vmem>>, vector<1x128xf32>
      %15 = vector.broadcast %14 : vector<1x128xf32> to vector<16x128xf32>
      %16 = arith.addf %13, %15 : vector<16x128xf32>
      %17 = math.tanh %16 : vector<16x128xf32>
      %18 = arith.truncf %17 : vector<16x128xf32> to vector<16x128xbf16>
      %c0_13 = arith.constant 0 : index
      %c0_14 = arith.constant 0 : index
      %19 = vector.load %arg5[%c0_13, %c0_14] : memref<128x128xbf16, #tpu.memory_space<vmem>>, vector<128x128xbf16>
      %cst_15 = arith.constant dense<0.000000e+00> : vector<16x128xf32>
      %20 = tpu.matmul %18, %19, %cst_15 {dimension_numbers = #tpu.dot_dimension_numbers<[1], [0], [0], [1], [0, 0, 1, 1], [], []>} : vector<16x128xbf16>, vector<128x128xbf16>, vector<16x128xf32> -> vector<16x128xf32>
      %c0_16 = arith.constant 0 : index
      %c0_17 = arith.constant 0 : index
      %21 = vector.load %arg6[%c0_16, %c0_17] : memref<1x128xf32, #tpu.memory_space<vmem>>, vector<1x128xf32>
      %22 = vector.broadcast %21 : vector<1x128xf32> to vector<16x128xf32>
      %23 = arith.addf %20, %22 : vector<16x128xf32>
      %24 = math.tanh %23 : vector<16x128xf32>
      %25 = arith.truncf %24 : vector<16x128xf32> to vector<16x128xbf16>
      %c0_18 = arith.constant 0 : index
      %c0_19 = arith.constant 0 : index
      %26 = vector.load %arg7[%c0_18, %c0_19] : memref<128x256xbf16, #tpu.memory_space<vmem>>, vector<128x256xbf16>
      %cst_20 = arith.constant dense<0.000000e+00> : vector<16x256xf32>
      %27 = tpu.matmul %25, %26, %cst_20 {dimension_numbers = #tpu.dot_dimension_numbers<[1], [0], [0], [1], [0, 0, 1, 1], [], []>} : vector<16x128xbf16>, vector<128x256xbf16>, vector<16x256xf32> -> vector<16x256xf32>
      %c0_21 = arith.constant 0 : index
      %c0_22 = arith.constant 0 : index
      %28 = vector.load %arg8[%c0_21, %c0_22] : memref<1x256xf32, #tpu.memory_space<vmem>>, vector<1x256xf32>
      %29 = vector.broadcast %28 : vector<1x256xf32> to vector<16x256xf32>
      %30 = arith.addf %27, %29 : vector<16x256xf32>
      %31 = vector.extract_strided_slice %30 {offsets = [0, 0], sizes = [16, 128], strides = [1, 1]} : vector<16x256xf32> to vector<16x128xf32>
      %c0_23 = arith.constant 0 : index
      %c0_24 = arith.constant 0 : index
      %32 = vector.load %arg9[%c0_23, %c0_24] : memref<16x128xf32, #tpu.memory_space<vmem>>, vector<16x128xf32>
      tpu.vector_store %arg9[%c0_23, %c0_24], %31 {strides = array<i32>} : memref<16x128xf32, #tpu.memory_space<vmem>>, vector<16x128xf32>,
      %33 = vector.extract_strided_slice %30 {offsets = [0, 128], sizes = [16, 128], strides = [1, 1]} : vector<16x256xf32> to vector<16x128xf32>
      %c0_25 = arith.constant 0 : index
      %c0_26 = arith.constant 0 : index
      %34 = vector.load %arg10[%c0_25, %c0_26] : memref<16x128xf32, #tpu.memory_space<vmem>>, vector<16x128xf32>
      tpu.vector_store %arg10[%c0_25, %c0_26], %33 {strides = array<i32>} : memref<16x128xf32, #tpu.memory_space<vmem>>, vector<16x128xf32>,
    } else {
    }
    return
  }
  func.func @transform_0(%arg0: i32, %arg1: i32) -> (i32, i32) {
    %c0_i32 = arith.constant 0 : i32
    return %arg0, %arg1 : i32, i32
  }
  func.func @transform_1(%arg0: i32, %arg1: i32) -> (i32, i32) {
    %c0_i32 = arith.constant 0 : i32
    %c0_i32_0 = arith.constant 0 : i32
    return %arg1, %c0_i32 : i32, i32
  }
  func.func @transform_2(%arg0: i32, %arg1: i32) -> (i32, i32) {
    %c0_i32 = arith.constant 0 : i32
    %c0_i32_0 = arith.constant 0 : i32
    %c0_i32_1 = arith.constant 0 : i32
    return %c0_i32, %c0_i32_0 : i32, i32
  }
  func.func @transform_3(%arg0: i32, %arg1: i32) -> (i32, i32) {
    %c0_i32 = arith.constant 0 : i32
    %c0_i32_0 = arith.constant 0 : i32
    %c0_i32_1 = arith.constant 0 : i32
    return %c0_i32, %c0_i32_0 : i32, i32
  }
  func.func @transform_4(%arg0: i32, %arg1: i32) -> (i32, i32) {
    %c0_i32 = arith.constant 0 : i32
    %c0_i32_0 = arith.constant 0 : i32
    %c0_i32_1 = arith.constant 0 : i32
    return %c0_i32, %c0_i32_0 : i32, i32
  }
  func.func @transform_5(%arg0: i32, %arg1: i32) -> (i32, i32) {
    %c0_i32 = arith.constant 0 : i32
    %c0_i32_0 = arith.constant 0 : i32
    %c0_i32_1 = arith.constant 0 : i32
    return %c0_i32, %c0_i32_0 : i32, i32
  }
  func.func @transform_6(%arg0: i32, %arg1: i32) -> (i32, i32) {
    %c0_i32 = arith.constant 0 : i32
    %c0_i32_0 = arith.constant 0 : i32
    %c0_i32_1 = arith.constant 0 : i32
    return %c0_i32, %c0_i32_0 : i32, i32
  }
  func.func @transform_7(%arg0: i32, %arg1: i32) -> (i32, i32) {
    %c0_i32 = arith.constant 0 : i32
    %c0_i32_0 = arith.constant 0 : i32
    return %arg0, %c0_i32 : i32, i32
  }
  func.func @transform_8(%arg0: i32, %arg1: i32) -> (i32, i32) {
    %c0_i32 = arith.constant 0 : i32
    %c0_i32_0 = arith.constant 0 : i32
    return %arg0, %c0_i32 : i32, i32
  }
}

</mosaic_0001>

<bundles_post_ra>
// kernel: _encoder_pallas.1
= control target key start
LH: loop header
LB: loop body
LE: loop exit
PB: predicated region body
PF: predicated region fallthrough
CT: control target
= control target key end

     0   :  { %14 = vsyncpa [#allocation5], 0  ;;  %s3517_s0 = inlined_call_operand.vmem [shape: f32[16,4096], index: 0, kind: input, shape index: {}]   ;;  %s3518_s1 = inlined_call_operand.hbm [shape: bf16[4096,128], index: 1, kind: input, shape index: {}]   ;;  %s3519_s2 = inlined_call_operand.vmem [shape: f32[1,128], index: 2, kind: input, shape index: {}]   ;;  %s3520_s3 = inlined_call_operand.vmem [shape: bf16[128,128], index: 3, kind: input, shape index: {}]   ;;  %s3521_s4 = inlined_call_operand.vmem [shape: f32[1,128], index: 4, kind: input, shape index: {}]   ;;  %s3522_s5 = inlined_call_operand.vmem [shape: bf16[128,256], index: 5, kind: input, shape index: {}]   ;;  %s3523_s6 = inlined_call_operand.vmem [shape: f32[1,256], index: 6, kind: input, shape index: {}]   ;;  %s3524_s7 = inlined_call_operand.hbm [shape: f32[16,128], index: 7, kind: output, shape index: {0}]   ;;  %s3525_s8 = inlined_call_operand.hbm [shape: f32[16,128], index: 8, kind: output, shape index: {1}]  }
   0x1   :  { %16 = vsyncpa [#allocation5 + $0x1], 0 }
   0x2   :  { %17 = vsyncpa [#allocation6], 0 }
   0x3   :  { %18 = vsyncpa [#allocation9], 0  ;;  %s3080_s27 = smov 0   ;;  %s3082_s28 = smov 0  }
   0x4   :  { %s3084_s29 = smov 0   ;;  %s3086_s30 = smov 0  }
   0x5   :  { %s3088_s9 = smov 0   ;;  %s3090_s10 = smov 0  }
   0x6 LB: > { %s3526_s11 = sadd.s32 4294967295, %s3022_s10   ;;  %s33_s12 = sadd.s32 1, %s3018_s9  ;;  %s3022_s10 = sphi %s3090_s10, %s24_s10   ;;  %s3018_s9 = sphi %s3088_s9, %s3535_s9   ;;  %s3014_s30 = sphi %s3086_s30, %s3534_s30   ;;  %s3010_s29 = sphi %s3084_s29, %s3533_s29   ;;  %s3006_s28 = sphi %s3082_s28, %s3532_s28   ;;  %s3002_s27 = sphi %s3080_s27, %s3531_s27  }
   0x7   : > { %p34_p0 = scmp.ge.s32.totalorder %s33_s12, 2  ;;  %s45_s13 = sadd.s32 1, %s3010_s29 }
   0x8   : > { %p52_p1 = scmp.ne.s32.totalorder %s3010_s29, %s3006_s28  ;;  %p53_p2 = scmp.eq.s32.totalorder %s3022_s10, 0 }
   0x9   : > { %s3537_s12 = smov (%p34_p0, %s33_s12), 0  ;;  %p84_p4 = scmp.ne.s32.totalorder %s3006_s28, %s3002_s27 }
   0xa   : > { %p3116_p3 = por %p53_p2, %p52_p1  ;;  %s41_s15 = ssub.s32 %s3018_s9, %s3537_s12 }
   0xb   : > { %p85_p5 = scmp.eq.s32.totalorder %s3526_s11, 0  ;;  %p43_p6 = scmp.eq.s32.totalorder %s41_s15, 0 }
   0xc   : > { %p2271_p8 = scmp.ge.s32.totalorder %s3022_s10, 2 }
   0xd   : > { %p3125_p7 = por %p85_p5, %p84_p4 }
   0xe   : > { %s3130_s17 = scalar_select %p43_p6, %s3010_s29, %s45_s13  }
   0xf   : > { %276 = sbr.rel (%p2271_p8) target bundleno = 56 (0x38), region = 36 }
  0x14   : > { %279 = sbr.rel (!%p3116_p3) target bundleno = 40 (0x28), region = 40  ;;  %s281_s18 = sand.u32 (%p3116_p3), 1, %s3010_s29  }
  0x15   : > { %s2443_s19 = sshll.u32 (%p3116_p3), %s3018_s9, 7  ;;  %s2272_s20 = sshll.u32 (%p3116_p3), %s281_s18, 8 }
  0x16   : > { %s3140_s23 = scalar_lea.vmem (%p3116_p3), %s3517_s0, %s2443_s19  ;;  %s3145_s24 = scalar_lea.vmem (%p3116_p3), [#allocation3], %s2272_s20 }
  0x17   : > { %v302_v0 = vld [vmem:[%s3140_s23] sm:$0xff] (%p3116_p3)  ;;  %v304_v1 = vld [vmem:[%s3140_s23 + $0x8] sm:$0xff] (%p3116_p3)  ;;  %v306_v2 = vld [vmem:[%s3140_s23 + $0x10] sm:$0xff] (%p3116_p3) }
  0x18   : > { %303 = vst [vmem:[%s3145_s24] sm:$0xff] (%p3116_p3), %v302_v0  ;;  %305 = vst [vmem:[%s3145_s24 + $0x8] sm:$0xff] (%p3116_p3), %v304_v1  ;;  %v308_v3 = vld [vmem:[%s3140_s23 + $0x18] sm:$0xff] (%p3116_p3)  ;;  %v310_v4 = vld [vmem:[%s3140_s23 + $0x20] sm:$0xff] (%p3116_p3) }
  0x19   : > { %307 = vst [vmem:[%s3145_s24 + $0x10] sm:$0xff] %v306_v2  ;;  %v312_v5 = vld [vmem:[%s3140_s23 + $0x28] sm:$0xff]  ;;  %309 = vst [vmem:[%s3145_s24 + $0x18] sm:$0xff] %v308_v3  ;;  %v314_v6 = vld [vmem:[%s3140_s23 + $0x30] sm:$0xff] }
  0x1a   : > { %311 = vst [vmem:[%s3145_s24 + $0x20] sm:$0xff] %v310_v4  ;;  %313 = vst [vmem:[%s3145_s24 + $0x28] sm:$0xff] %v312_v5  ;;  %v316_v7 = vld [vmem:[%s3140_s23 + $0x38] sm:$0xff]  ;;  %v318_v8 = vld [vmem:[%s3140_s23 + $0x40] sm:$0xff] }
  0x1b   : > { %315 = vst [vmem:[%s3145_s24 + $0x30] sm:$0xff] %v314_v6  ;;  %317 = vst [vmem:[%s3145_s24 + $0x38] sm:$0xff] %v316_v7  ;;  %v320_v9 = vld [vmem:[%s3140_s23 + $0x48] sm:$0xff]  ;;  %v322_v10 = vld [vmem:[%s3140_s23 + $0x50] sm:$0xff] }
  0x1c   : > { %319 = vst [vmem:[%s3145_s24 + $0x40] sm:$0xff] %v318_v8  ;;  %v324_v11 = vld [vmem:[%s3140_s23 + $0x58] sm:$0xff]  ;;  %321 = vst [vmem:[%s3145_s24 + $0x48] sm:$0xff] %v320_v9  ;;  %v326_v12 = vld [vmem:[%s3140_s23 + $0x60] sm:$0xff] }
  0x1d   : > { %323 = vst [vmem:[%s3145_s24 + $0x50] sm:$0xff] %v322_v10  ;;  %325 = vst [vmem:[%s3145_s24 + $0x58] sm:$0xff] %v324_v11  ;;  %v328_v13 = vld [vmem:[%s3140_s23 + $0x68] sm:$0xff]  ;;  %v330_v14 = vld [vmem:[%s3140_s23 + $0x70] sm:$0xff] }
  0x1e   : > { %327 = vst [vmem:[%s3145_s24 + $0x60] sm:$0xff] %v326_v12  ;;  %329 = vst [vmem:[%s3145_s24 + $0x68] sm:$0xff] %v328_v13  ;;  %v332_v15 = vld [vmem:[%s3140_s23 + $0x78] sm:$0xff]  ;;  %v334_v16 = vld [vmem:[%s3140_s23 + $0x100] sm:$0xff] }
  0x1f   : > { %331 = vst [vmem:[%s3145_s24 + $0x70] sm:$0xff] %v330_v14  ;;  %v336_v17 = vld [vmem:[%s3140_s23 + $0x108] sm:$0xff]  ;;  %333 = vst [vmem:[%s3145_s24 + $0x78] sm:$0xff] %v332_v15  ;;  %v338_v18 = vld [vmem:[%s3140_s23 + $0x110] sm:$0xff] }
  0x20   : > { %335 = vst [vmem:[%s3145_s24 + $0x80] sm:$0xff] %v334_v16  ;;  %337 = vst [vmem:[%s3145_s24 + $0x88] sm:$0xff] %v336_v17  ;;  %v340_v19 = vld [vmem:[%s3140_s23 + $0x118] sm:$0xff]  ;;  %v342_v20 = vld [vmem:[%s3140_s23 + $0x120] sm:$0xff] }
  0x21   : > { %339 = vst [vmem:[%s3145_s24 + $0x90] sm:$0xff] %v338_v18  ;;  %341 = vst [vmem:[%s3145_s24 + $0x98] sm:$0xff] %v340_v19  ;;  %v344_v21 = vld [vmem:[%s3140_s23 + $0x128] sm:$0xff]  ;;  %v346_v22 = vld [vmem:[%s3140_s23 + $0x130] sm:$0xff] }
  0x22   : > { %343 = vst [vmem:[%s3145_s24 + $0xa0] sm:$0xff] %v342_v20  ;;  %v348_v23 = vld [vmem:[%s3140_s23 + $0x138] sm:$0xff]  ;;  %345 = vst [vmem:[%s3145_s24 + $0xa8] sm:$0xff] %v344_v21  ;;  %v350_v24 = vld [vmem:[%s3140_s23 + $0x140] sm:$0xff] }
  0x23   : > { %347 = vst [vmem:[%s3145_s24 + $0xb0] sm:$0xff] %v346_v22  ;;  %349 = vst [vmem:[%s3145_s24 + $0xb8] sm:$0xff] %v348_v23  ;;  %v352_v25 = vld [vmem:[%s3140_s23 + $0x148] sm:$0xff]  ;;  %v354_v26 = vld [vmem:[%s3140_s23 + $0x150] sm:$0xff] }
  0x24   : > { %351 = vst [vmem:[%s3145_s24 + $0xc0] sm:$0xff] %v350_v24  ;;  %353 = vst [vmem:[%s3145_s24 + $0xc8] sm:$0xff] %v352_v25  ;;  %v356_v27 = vld [vmem:[%s3140_s23 + $0x158] sm:$0xff]  ;;  %v358_v28 = vld [vmem:[%s3140_s23 + $0x160] sm:$0xff] }
  0x25   : > { %355 = vst [vmem:[%s3145_s24 + $0xd0] sm:$0xff] %v354_v26  ;;  %v360_v29 = vld [vmem:[%s3140_s23 + $0x168] sm:$0xff]  ;;  %357 = vst [vmem:[%s3145_s24 + $0xd8] sm:$0xff] %v356_v27  ;;  %v362_v30 = vld [vmem:[%s3140_s23 + $0x170] sm:$0xff] }
  0x26   : > { %359 = vst [vmem:[%s3145_s24 + $0xe0] sm:$0xff] %v358_v28  ;;  %361 = vst [vmem:[%s3145_s24 + $0xe8] sm:$0xff] %v360_v29  ;;  %v364_v31 = vld [vmem:[%s3140_s23 + $0x178] sm:$0xff] }
  0x27   : > { %363 = vst [vmem:[%s3145_s24 + $0xf0] sm:$0xff] %v362_v30  ;;  %365 = vst [vmem:[%s3145_s24 + $0xf8] sm:$0xff] %v364_v31 }
  0x28 PF: > { %s372_s25 = sand.u32 1, %s3010_s29   ;;  %s2444_s26 = sshll.u32 %s3018_s9, 14 }
  0x29   : > { %s2275_s27 = sshll.u32 %s372_s25, 10  ;;  %s382_s18 = scalar_lea.hbm %s3518_s1, %s2444_s26 }
  0x2a   : > { %s376_s19 = scalar_lea.vmem [#allocation4], %s2275_s27  ;;  %s373_s21 = scalar_lea.sflag [#allocation5], %s372_s25 }
  0x2b   : > { %s383_s20 = sshll.u32 %s376_s19, 4  ;;  %s3024_s23 = smov [#allocation4]   ;;  %s384_s20 = int_to_ptr.vmem [resolvable:$true] %s383_s20 }
  0x2c   : > { %s2902_s22 = scalar_lea.vmem %s384_s20, 16384  ;;  %s2906_s24 = sshll.u32 %s3024_s23, 4  ;;  %s2907_s24 = int_to_ptr.vmem [resolvable:$false] %s2906_s24 }
  0x2d   : > { %p2903_p9 = scmp.ne.s32.totalorder %s384_s20, %s2902_s22  ;;  %s2908_s11 = scalar_lea.vmem %s2907_s24, 32768 }
  0x2e   : > { %p2909_p12 = scmp.lt.s32.totalorder %s384_s20, %s2907_s24  ;;  %p2910_p13 = scmp.lt.s32.totalorder %s2908_s11, %s2902_s22 }
  0x2f   : > { %p2904_p10 = pnand %p2903_p9, %p3116_p3 }
  0x30   : > { %p2911_p0 = por %p2910_p13, %p2909_p12 }
  0x31   : > { %p2905_p11 = pneg %p2904_p10 }
  0x33   : > { %p2912_p1 = pnand %p2911_p0, %p2905_p11 }
  0x35   : > { %2915 = shalt.err (!%p2912_p1)
}
  0x36   : > { %s3025_s13 = smov 64   ;;  %s3026_s26 = smov 4  }
  0x37   : > { %2650 = dma.hbm_to_vmem [thread:$0]  (%p3116_p3), %s382_s18, 16384, %s384_s20, %s373_s21, %s3025_s13, %s3025_s13, %s3026_s26  }
  0x38 PF: > { %p2278_p2 = scmp.ge.s32.totalorder %s3022_s10, 1  ;;  %p391_p4 = scmp.lt.s32.totalorder %s3022_s10, 3 }
  0x3a   : > { %p392_p5 = pnand %p2278_p2, %p391_p4 }
  0x3b   : > { %s398_s25 = sand.u32 (!%p392_p5), 1, %s3006_s28  }
  0x3c   : > { %395 = sbr.rel (%p392_p5) target bundleno = 894 (0x37e), region = 67  ;;  %s2279_s27 = sshll.u32 (!%p392_p5), %s398_s25, 8 }
  0x3d   : > { %s2280_s11 = sshll.u32 (!%p392_p5), %s398_s25, 10  ;;  %s3220_s15 = scalar_lea.vmem (!%p392_p5), [#allocation3], %s2279_s27 }
  0x3e   : > { %s405_s19 = scalar_lea.sflag (!%p392_p5), [#allocation5], %s398_s25  ;;  %s3222_s22 = scalar_lea.vmem (!%p392_p5), [#allocation4], %s2280_s11 }
  0x41   : > { %2989 = dma.done.wait (%p3125_p7), %s405_s19, 16384  }
  0x42   : > { %2991 = vsyncadd (%p3125_p7), %s405_s19, 4294950912  ;;  %p2281_p3 = scmp.ne.s32.totalorder %s3014_s30, 0 }
  0x44   : > { %449 = sbr.rel (%p2281_p3) target bundleno = 75 (0x4b), region = 79 }
  0x49   : > { %v3027_v32 = vmov 0.0  }
  0x4a   : > { %450 = vst [vmem:[#allocation2] sm:$0xff] %v3027_v32  ;;  %451 = vst [vmem:[#allocation2 + $0x8] sm:$0xff] %v3027_v32 }
  0x4b PF: > { %v2722_v33 = vld [vmem:[%s3222_s22 + $0x78] sm:$0xff]   ;;  %v2726_v37 = vld [vmem:[%s3222_s22 + $0x70] sm:$0xff]   ;;  %v2730_v41 = vld [vmem:[%s3222_s22 + $0x68] sm:$0xff]   ;;  %p2410_p6 = scmp.ne.s32.totalorder %s3014_s30, 1 }
  0x4c   : > { %v2723_v34 = vld [vmem:[%s3222_s22 + $0xf8] sm:$0xff]   ;;  %2445 = vmatprep.subr.bf16.mxu0 %v2722_v33  ;;  %v2727_v38 = vld [vmem:[%s3222_s22 + $0xf0] sm:$0xff]   ;;  %v2731_v42 = vld [vmem:[%s3222_s22 + $0xe8] sm:$0xff]  }
  0x4d   : > { %v2724_v35 = vld [vmem:[%s3222_s22 + $0x38] sm:$0xff]   ;;  %2467 = vmatprep.subr.bf16.mxu1 %v2723_v34  ;;  %v2728_v39 = vld [vmem:[%s3222_s22 + $0x30] sm:$0xff]   ;;  %v2732_v43 = vld [vmem:[%s3222_s22 + $0x28] sm:$0xff]  }
  0x4e   : > { %v2725_v36 = vld [vmem:[%s3222_s22 + $0xb8] sm:$0xff]   ;;  %2446 = vmatpush3.bf16.msra.mxu0 %v2724_v35  ;;  %v2729_v40 = vld [vmem:[%s3222_s22 + $0xb0] sm:$0xff]   ;;  %v2733_v44 = vld [vmem:[%s3222_s22 + $0xa8] sm:$0xff]  }
  0x4f   : > { %2468 = vmatpush3.bf16.msra.mxu1 %v2725_v36  ;;  %2447 = vmatprep.subr.bf16.mxu0 %v2726_v37  ;;  %v2734_v45 = vld [vmem:[%s3222_s22 + $0x60] sm:$0xff]   ;;  %v2738_v49 = vld [vmem:[%s3222_s22 + $0x58] sm:$0xff]   ;;  %v2742_v53 = vld [vmem:[%s3222_s22 + $0x50] sm:$0xff]  }
  0x50   : > { %2469 = vmatprep.subr.bf16.mxu1 %v2727_v38  ;;  %v2735_v46 = vld [vmem:[%s3222_s22 + $0xe0] sm:$0xff]   ;;  %v2739_v50 = vld [vmem:[%s3222_s22 + $0xd8] sm:$0xff]   ;;  %v2743_v54 = vld [vmem:[%s3222_s22 + $0xd0] sm:$0xff]  }
  0x51   : > { %v2736_v47 = vld [vmem:[%s3222_s22 + $0x20] sm:$0xff]   ;;  %v2740_v51 = vld [vmem:[%s3222_s22 + $0x18] sm:$0xff]   ;;  %v2744_v55 = vld [vmem:[%s3222_s22 + $0x10] sm:$0xff]  }
  0x52   : > { %2448 = vmatpush3.bf16.msra.mxu0 %v2728_v39  ;;  %v2737_v48 = vld [vmem:[%s3222_s22 + $0xa0] sm:$0xff]   ;;  %v2741_v52 = vld [vmem:[%s3222_s22 + $0x98] sm:$0xff]   ;;  %v2745_v56 = vld [vmem:[%s3222_s22 + $0x90] sm:$0xff]  }
  0x53   : > { %2470 = vmatpush3.bf16.msra.mxu1 %v2729_v40  ;;  %2449 = vmatprep.subr.bf16.mxu0 %v2730_v41  ;;  %v2746_v57 = vld [vmem:[%s3222_s22 + $0x48] sm:$0xff]   ;;  %v2750_v61 = vld [vmem:[%s3222_s22 + $0x40] sm:$0xff]   ;;  %v457_v3 = vld [vmem:[%s3220_s15 + $0x18] sm:$0xff] }
  0x54   : > { %2471 = vmatprep.subr.bf16.mxu1 %v2731_v42  ;;  %v2747_v58 = vld [vmem:[%s3222_s22 + $0xc8] sm:$0xff]   ;;  %v2751_v62 = vld [vmem:[%s3222_s22 + $0xc0] sm:$0xff]   ;;  %v473_v5 = vld [vmem:[%s3220_s15 + $0x98] sm:$0xff] }
  0x55   : > { %v2748_v59 = vld [vmem:[%s3222_s22 + $0x8] sm:$0xff]   ;;  %v2752_v63 = vld [vmem:[%s3222_s22] sm:$0xff]   ;;  %v489_v8 = vpack.c.bf16 %v473_v5, %v457_v3  ;;  %v456_v10 = vld [vmem:[%s3220_s15 + $0x10] sm:$0xff] }
  0x56   : > { %2450 = vmatpush3.bf16.msra.mxu0 %v2732_v43  ;;  %v2749_v60 = vld [vmem:[%s3222_s22 + $0x88] sm:$0xff]   ;;  %v2753_v0 = vld [vmem:[%s3222_s22 + $0x80] sm:$0xff]   ;;  %v472_v11 = vld [vmem:[%s3220_s15 + $0x90] sm:$0xff] }
  0x57   : > { %2472 = vmatpush3.bf16.msra.mxu1 %v2733_v44  ;;  %2451 = vmatprep.subr.bf16.mxu0 %v2734_v45  ;;  %v455_v1 = vld [vmem:[%s3220_s15 + $0x8] sm:$0xff]  ;;  %v454_v6 = vld [vmem:[%s3220_s15] sm:$0xff]  ;;  %v488_v12 = vpack.c.bf16 %v472_v11, %v456_v10  ;;  %v2754_v13 = vld [vmem:[%s3222_s22 + $0x178] sm:$0xff]  }
  0x58   : > { %2473 = vmatprep.subr.bf16.mxu1 %v2735_v46  ;;  %v471_v2 = vld [vmem:[%s3220_s15 + $0x88] sm:$0xff]  ;;  %v470_v7 = vld [vmem:[%s3220_s15 + $0x80] sm:$0xff]  ;;  %1599 = vmatprep.mubr.bf16.mxu1 %v489_v8  ;;  %v2755_v14 = vld [vmem:[%s3222_s22 + $0x1f8] sm:$0xff]  }
  0x59   : > { %v487_v4 = vpack.c.bf16 %v471_v2, %v455_v1  ;;  %v486_v9 = vpack.c.bf16 %v470_v7, %v454_v6  ;;  %v2756_v15 = vld [vmem:[%s3222_s22 + $0x138] sm:$0xff]   ;;  %v2758_v17 = vld [vmem:[%s3222_s22 + $0x170] sm:$0xff]   ;;  %v2762_v21 = vld [vmem:[%s3222_s22 + $0x168] sm:$0xff]  }
  0x5a   : > { %2452 = vmatpush3.bf16.msra.mxu0 %v2736_v47  ;;  %v2757_v16 = vld [vmem:[%s3222_s22 + $0x1b8] sm:$0xff]   ;;  %v2759_v18 = vld [vmem:[%s3222_s22 + $0x1f0] sm:$0xff]   ;;  %v2763_v22 = vld [vmem:[%s3222_s22 + $0x1e8] sm:$0xff]  }
  0x5b   : > { %2474 = vmatpush3.bf16.msra.mxu1 %v2737_v48  ;;  %2453 = vmatprep.subr.bf16.mxu0 %v2738_v49  ;;  %v2760_v19 = vld [vmem:[%s3222_s22 + $0x130] sm:$0xff]   ;;  %v2764_v23 = vld [vmem:[%s3222_s22 + $0x128] sm:$0xff]   ;;  %v2766_v25 = vld [vmem:[%s3222_s22 + $0x160] sm:$0xff]  }
  0x5c   : > { %2475 = vmatprep.subr.bf16.mxu1 %v2739_v50  ;;  %1558 = vmatprep.mubr.bf16.mxu0 %v487_v4  ;;  %v2761_v20 = vld [vmem:[%s3222_s22 + $0x1b0] sm:$0xff]   ;;  %v2765_v24 = vld [vmem:[%s3222_s22 + $0x1a8] sm:$0xff]   ;;  %v2767_v26 = vld [vmem:[%s3222_s22 + $0x1e0] sm:$0xff]  }
  0x5d   : > { %v2768_v27 = vld [vmem:[%s3222_s22 + $0x120] sm:$0xff]   ;;  %v2770_v29 = vld [vmem:[%s3222_s22 + $0x158] sm:$0xff]   ;;  %v2774_v33 = vld [vmem:[%s3222_s22 + $0x150] sm:$0xff]  }
  0x5e   : > { %2454 = vmatpush3.bf16.msra.mxu0 %v2740_v51  ;;  %v2769_v28 = vld [vmem:[%s3222_s22 + $0x1a0] sm:$0xff]   ;;  %v2771_v30 = vld [vmem:[%s3222_s22 + $0x1d8] sm:$0xff]   ;;  %v2775_v34 = vld [vmem:[%s3222_s22 + $0x1d0] sm:$0xff]  }
  0x5f   : > { %2476 = vmatpush3.bf16.msra.mxu1 %v2741_v52  ;;  %2455 = vmatprep.subr.bf16.mxu0 %v2742_v53  ;;  %v2772_v31 = vld [vmem:[%s3222_s22 + $0x118] sm:$0xff]   ;;  %v2776_v35 = vld [vmem:[%s3222_s22 + $0x110] sm:$0xff]   ;;  %v2778_v37 = vld [vmem:[%s3222_s22 + $0x148] sm:$0xff]  }
  0x60   : > { %2477 = vmatprep.subr.bf16.mxu1 %v2743_v54  ;;  %v2773_v32 = vld [vmem:[%s3222_s22 + $0x198] sm:$0xff]   ;;  %v2777_v36 = vld [vmem:[%s3222_s22 + $0x190] sm:$0xff]   ;;  %v2779_v38 = vld [vmem:[%s3222_s22 + $0x1c8] sm:$0xff]  }
  0x61   : > { %v2780_v39 = vld [vmem:[%s3222_s22 + $0x108] sm:$0xff]   ;;  %v2782_v41 = vld [vmem:[%s3222_s22 + $0x140] sm:$0xff]   ;;  %v461_v47 = vld [vmem:[%s3220_s15 + $0x38] sm:$0xff] }
  0x62   : > { %2456 = vmatpush3.bf16.msra.mxu0 %v2744_v55  ;;  %v2781_v40 = vld [vmem:[%s3222_s22 + $0x188] sm:$0xff]   ;;  %v2783_v42 = vld [vmem:[%s3222_s22 + $0x1c0] sm:$0xff]   ;;  %v477_v48 = vld [vmem:[%s3220_s15 + $0xb8] sm:$0xff] }
  0x63   : > { %2478 = vmatpush3.bf16.msra.mxu1 %v2745_v56  ;;  %2457 = vmatprep.subr.bf16.mxu0 %v2746_v57  ;;  %v2784_v43 = vld [vmem:[%s3222_s22 + $0x100] sm:$0xff]   ;;  %v459_v45 = vld [vmem:[%s3220_s15 + $0x28] sm:$0xff]  ;;  %v493_v50 = vpack.c.bf16 %v477_v48, %v461_v47  ;;  %v460_v53 = vld [vmem:[%s3220_s15 + $0x30] sm:$0xff] }
  0x64   : > { %2479 = vmatprep.subr.bf16.mxu1 %v2747_v58  ;;  %v2785_v44 = vld [vmem:[%s3222_s22 + $0x180] sm:$0xff]   ;;  %v475_v46 = vld [vmem:[%s3220_s15 + $0xa8] sm:$0xff]  ;;  %v476_v55 = vld [vmem:[%s3220_s15 + $0xb0] sm:$0xff] }
  0x65   : > { %v491_v49 = vpack.c.bf16 %v475_v46, %v459_v45  ;;  %v458_v51 = vld [vmem:[%s3220_s15 + $0x20] sm:$0xff]  ;;  %v492_v56 = vpack.c.bf16 %v476_v55, %v460_v53  ;;  %v2786_v57 = vld [vmem:[%s3222_s22 + $0x278] sm:$0xff]   ;;  %v2794_v1 = vld [vmem:[%s3222_s22 + $0x268] sm:$0xff]  }
  0x66   : > { %2458 = vmatpush3.bf16.msra.mxu0 %v2748_v59  ;;  %v474_v52 = vld [vmem:[%s3220_s15 + $0xa0] sm:$0xff]  ;;  %v2787_v58 = vld [vmem:[%s3222_s22 + $0x2f8] sm:$0xff]   ;;  %v2795_v2 = vld [vmem:[%s3222_s22 + $0x2e8] sm:$0xff]  }
  0x67   : > { %2480 = vmatpush3.bf16.msra.mxu1 %v2749_v60  ;;  %2459 = vmatprep.subr.bf16.mxu0 %v2750_v61  ;;  %v490_v54 = vpack.c.bf16 %v474_v52, %v458_v51  ;;  %v2788_v59 = vld [vmem:[%s3222_s22 + $0x238] sm:$0xff]   ;;  %v2790_v61 = vld [vmem:[%s3222_s22 + $0x270] sm:$0xff]   ;;  %v2796_v3 = vld [vmem:[%s3222_s22 + $0x228] sm:$0xff]  }
  0x68   : > { %2481 = vmatprep.subr.bf16.mxu1 %v2751_v62  ;;  %v2789_v60 = vld [vmem:[%s3222_s22 + $0x2b8] sm:$0xff]   ;;  %v2791_v62 = vld [vmem:[%s3222_s22 + $0x2f0] sm:$0xff]   ;;  %v2797_v4 = vld [vmem:[%s3222_s22 + $0x2a8] sm:$0xff]  }
  0x69   : > { %v2798_v5 = vld [vmem:[%s3222_s22 + $0x260] sm:$0xff]   ;;  %v2803_v10 = vld [vmem:[%s3222_s22 + $0x2d8] sm:$0xff]   ;;  %v2826_v45 = vld [vmem:[%s3222_s22 + $0x368] sm:$0xff]  }
  0x6a   : > { %2460 = vmatpush3.bf16.msra.mxu0 %v2752_v63  ;;  %v2792_v63 = vld [vmem:[%s3222_s22 + $0x230] sm:$0xff]   ;;  %v2799_v6 = vld [vmem:[%s3222_s22 + $0x2e0] sm:$0xff]   ;;  %v2804_v11 = vld [vmem:[%s3222_s22 + $0x218] sm:$0xff]  }
  0x6b   : > { %2482 = vmatpush3.bf16.msra.mxu1 %v2753_v0  ;;  %2489 = vmatprep.subr.bf16.mxu0 %v2754_v13  ;;  %v2793_v0 = vld [vmem:[%s3222_s22 + $0x2b0] sm:$0xff]   ;;  %v2800_v7 = vld [vmem:[%s3222_s22 + $0x220] sm:$0xff]   ;;  %v2827_v46 = vld [vmem:[%s3222_s22 + $0x3e8] sm:$0xff]  }
  0x6c   : > { %2511 = vmatprep.subr.bf16.mxu1 %v2755_v14  ;;  %v2801_v8 = vld [vmem:[%s3222_s22 + $0x2a0] sm:$0xff]   ;;  %v2806_v13 = vld [vmem:[%s3222_s22 + $0x250] sm:$0xff]   ;;  %v2828_v47 = vld [vmem:[%s3222_s22 + $0x328] sm:$0xff]  }
  0x6d   : > { %1559 = vmatmul.mubr.bf16.vlgmr.msra.gmra.mxu0 %v486_v9  ;;  %v2802_v9 = vld [vmem:[%s3222_s22 + $0x258] sm:$0xff]   ;;  %v2807_v14 = vld [vmem:[%s3222_s22 + $0x2d0] sm:$0xff]   ;;  %v2829_v48 = vld [vmem:[%s3222_s22 + $0x3a8] sm:$0xff]  }
  0x6e   : > { %1600 = vmatmul.mubr.bf16.vlgmr.msra.gmra.mxu1 %v488_v12  ;;  %2490 = vmatpush3.bf16.msra.mxu0 %v2756_v15  ;;  %v2805_v12 = vld [vmem:[%s3222_s22 + $0x298] sm:$0xff]   ;;  %v2808_v15 = vld [vmem:[%s3222_s22 + $0x210] sm:$0xff]   ;;  %v2832_v51 = vld [vmem:[%s3222_s22 + $0x320] sm:$0xff]  }
  0x6f   : > { %2512 = vmatpush3.bf16.msra.mxu1 %v2757_v16  ;;  %2491 = vmatprep.subr.bf16.mxu0 %v2758_v17  ;;  %v2809_v16 = vld [vmem:[%s3222_s22 + $0x290] sm:$0xff]   ;;  %v2810_v17 = vld [vmem:[%s3222_s22 + $0x248] sm:$0xff]   ;;  %v2833_v52 = vld [vmem:[%s3222_s22 + $0x3a0] sm:$0xff]  }
  0x70   : > { %2513 = vmatprep.subr.bf16.mxu1 %v2759_v18  ;;  %1640 = vmatprep.mubr.bf16.mxu0 %v491_v49  ;;  %v2811_v18 = vld [vmem:[%s3222_s22 + $0x2c8] sm:$0xff]   ;;  %v2830_v49 = vld [vmem:[%s3222_s22 + $0x360] sm:$0xff]   ;;  %v2834_v53 = vld [vmem:[%s3222_s22 + $0x358] sm:$0xff]  }
  0x71   : > { %1681 = vmatprep.mubr.bf16.mxu1 %v493_v50  ;;  %v2831_v50 = vld [vmem:[%s3222_s22 + $0x3e0] sm:$0xff]   ;;  %v2836_v55 = vld [vmem:[%s3222_s22 + $0x318] sm:$0xff]  }
  0x72   : > { %2492 = vmatpush3.bf16.msra.mxu0 %v2760_v19  ;;  %v2812_v19 = vld [vmem:[%s3222_s22 + $0x208] sm:$0xff]  }
  0x73   : > { %2514 = vmatpush3.bf16.msra.mxu1 %v2761_v20  ;;  %2493 = vmatprep.subr.bf16.mxu0 %v2762_v21  ;;  %v2813_v20 = vld [vmem:[%s3222_s22 + $0x288] sm:$0xff]   ;;  %v2814_v21 = vld [vmem:[%s3222_s22 + $0x240] sm:$0xff]  }
  0x74   : > { %2515 = vmatprep.subr.bf16.mxu1 %v2763_v22  ;;  %v2815_v22 = vld [vmem:[%s3222_s22 + $0x2c0] sm:$0xff]  }
  0x76   : > { %2494 = vmatpush3.bf16.msra.mxu0 %v2764_v23  ;;  %v2816_v23 = vld [vmem:[%s3222_s22 + $0x200] sm:$0xff]  }
  0x77   : > { %2516 = vmatpush3.bf16.msra.mxu1 %v2765_v24  ;;  %2495 = vmatprep.subr.bf16.mxu0 %v2766_v25  ;;  %v2817_v24 = vld [vmem:[%s3222_s22 + $0x280] sm:$0xff]   ;;  %v463_v25 = vld [vmem:[%s3220_s15 + $0x48] sm:$0xff] }
  0x78   : > { %2517 = vmatprep.subr.bf16.mxu1 %v2767_v26  ;;  %v479_v26 = vld [vmem:[%s3220_s15 + $0xc8] sm:$0xff] }
  0x7a   : > { %2496 = vmatpush3.bf16.msra.mxu0 %v2768_v27  ;;  %v495_v27 = vpack.c.bf16 %v479_v26, %v463_v25 }
  0x7b   : > { %2518 = vmatpush3.bf16.msra.mxu1 %v2769_v28  ;;  %2497 = vmatprep.subr.bf16.mxu0 %v2770_v29  ;;  %v465_v28 = vld [vmem:[%s3220_s15 + $0x58] sm:$0xff] }
  0x7c   : > { %2519 = vmatprep.subr.bf16.mxu1 %v2771_v30  ;;  %v481_v29 = vld [vmem:[%s3220_s15 + $0xd8] sm:$0xff]  ;;  %v462_v30 = vld [vmem:[%s3220_s15 + $0x40] sm:$0xff] }
  0x7e   : > { %2498 = vmatpush3.bf16.msra.mxu0 %v2772_v31  ;;  %v497_v31 = vpack.c.bf16 %v481_v29, %v465_v28 }
  0x7f   : > { %2520 = vmatpush3.bf16.msra.mxu1 %v2773_v32  ;;  %2499 = vmatprep.subr.bf16.mxu0 %v2774_v33  ;;  %v478_v32 = vld [vmem:[%s3220_s15 + $0xc0] sm:$0xff]  ;;  %v464_v33 = vld [vmem:[%s3220_s15 + $0x50] sm:$0xff] }
  0x80   : > { %2521 = vmatprep.subr.bf16.mxu1 %v2775_v34  ;;  %v480_v34 = vld [vmem:[%s3220_s15 + $0xd0] sm:$0xff] }
  0x82   : > { %2500 = vmatpush3.bf16.msra.mxu0 %v2776_v35  ;;  %v494_v35 = vpack.c.bf16 %v478_v32, %v462_v30 }
  0x83   : > { %2522 = vmatpush3.bf16.msra.mxu1 %v2777_v36  ;;  %2501 = vmatprep.subr.bf16.mxu0 %v2778_v37  ;;  %v496_v36 = vpack.c.bf16 %v480_v34, %v464_v33  ;;  %v2818_v37 = vld [vmem:[%s3222_s22 + $0x378] sm:$0xff]  }
  0x84   : > { %2523 = vmatprep.subr.bf16.mxu1 %v2779_v38  ;;  %v2819_v38 = vld [vmem:[%s3222_s22 + $0x3f8] sm:$0xff]  }
  0x86   : > { %2502 = vmatpush3.bf16.msra.mxu0 %v2780_v39  ;;  %v2820_v39 = vld [vmem:[%s3222_s22 + $0x338] sm:$0xff]  }
  0x87   : > { %2524 = vmatpush3.bf16.msra.mxu1 %v2781_v40  ;;  %2503 = vmatprep.subr.bf16.mxu0 %v2782_v41  ;;  %v2821_v40 = vld [vmem:[%s3222_s22 + $0x3b8] sm:$0xff]   ;;  %v2822_v41 = vld [vmem:[%s3222_s22 + $0x370] sm:$0xff]  }
  0x88   : > { %2525 = vmatprep.subr.bf16.mxu1 %v2783_v42  ;;  %v2823_v42 = vld [vmem:[%s3222_s22 + $0x3f0] sm:$0xff]  }
  0x8a   : > { %2504 = vmatpush3.bf16.msra.mxu0 %v2784_v43  ;;  %v2824_v43 = vld [vmem:[%s3222_s22 + $0x330] sm:$0xff]  }
  0x8b   : > { %2526 = vmatpush3.bf16.msra.mxu1 %v2785_v44  ;;  %2533 = vmatprep.subr.bf16.mxu0 %v2786_v57  ;;  %v2825_v44 = vld [vmem:[%s3222_s22 + $0x3b0] sm:$0xff]  }
  0x8c   : > { %2555 = vmatprep.subr.bf16.mxu1 %v2787_v58  ;;  %v2838_v57 = vld [vmem:[%s3222_s22 + $0x350] sm:$0xff]  }
  0x8d   : > { %1641 = vmatmul.mubr.bf16.vlgmr.msra.gmra.mxu0 %v490_v54  ;;  %v2835_v54 = vld [vmem:[%s3222_s22 + $0x3d8] sm:$0xff]   ;;  %v2839_v58 = vld [vmem:[%s3222_s22 + $0x3d0] sm:$0xff]  }
  0x8e   : > { %1682 = vmatmul.mubr.bf16.vlgmr.msra.gmra.mxu1 %v492_v56  ;;  %2534 = vmatpush3.bf16.msra.mxu0 %v2788_v59  ;;  %v2837_v56 = vld [vmem:[%s3222_s22 + $0x398] sm:$0xff]   ;;  %v2840_v59 = vld [vmem:[%s3222_s22 + $0x310] sm:$0xff]  }
  0x8f   : > { %2556 = vmatpush3.bf16.msra.mxu1 %v2789_v60  ;;  %2535 = vmatprep.subr.bf16.mxu0 %v2790_v61  ;;  %v2841_v60 = vld [vmem:[%s3222_s22 + $0x390] sm:$0xff]   ;;  %v2842_v61 = vld [vmem:[%s3222_s22 + $0x348] sm:$0xff]  }
  0x90   : > { %2557 = vmatprep.subr.bf16.mxu1 %v2791_v62  ;;  %1722 = vmatprep.mubr.bf16.mxu0 %v495_v27  ;;  %v2843_v62 = vld [vmem:[%s3222_s22 + $0x3c8] sm:$0xff]  }
  0x91   : > { %1763 = vmatprep.mubr.bf16.mxu1 %v497_v31 }
  0x92   : > { %2536 = vmatpush3.bf16.msra.mxu0 %v2792_v63  ;;  %v2844_v63 = vld [vmem:[%s3222_s22 + $0x308] sm:$0xff]  }
  0x93   : > { %2558 = vmatpush3.bf16.msra.mxu1 %v2793_v0  ;;  %2537 = vmatprep.subr.bf16.mxu0 %v2794_v1  ;;  %v2845_v0 = vld [vmem:[%s3222_s22 + $0x388] sm:$0xff]   ;;  %v2846_v1 = vld [vmem:[%s3222_s22 + $0x340] sm:$0xff]  }
  0x94   : > { %2559 = vmatprep.subr.bf16.mxu1 %v2795_v2  ;;  %v2847_v2 = vld [vmem:[%s3222_s22 + $0x3c0] sm:$0xff]  }
  0x96   : > { %2538 = vmatpush3.bf16.msra.mxu0 %v2796_v3  ;;  %v2848_v3 = vld [vmem:[%s3222_s22 + $0x300] sm:$0xff]  }
  0x97   : > { %2560 = vmatpush3.bf16.msra.mxu1 %v2797_v4  ;;  %2539 = vmatprep.subr.bf16.mxu0 %v2798_v5  ;;  %v2849_v4 = vld [vmem:[%s3222_s22 + $0x380] sm:$0xff]   ;;  %v467_v5 = vld [vmem:[%s3220_s15 + $0x68] sm:$0xff] }
  0x98   : > { %2561 = vmatprep.subr.bf16.mxu1 %v2799_v6  ;;  %v483_v6 = vld [vmem:[%s3220_s15 + $0xe8] sm:$0xff] }
  0x9a   : > { %2540 = vmatpush3.bf16.msra.mxu0 %v2800_v7  ;;  %v469_v7 = vld [vmem:[%s3220_s15 + $0x78] sm:$0xff] }
  0x9b   : > { %2562 = vmatpush3.bf16.msra.mxu1 %v2801_v8  ;;  %2541 = vmatprep.subr.bf16.mxu0 %v2802_v9  ;;  %v499_v8 = vpack.c.bf16 %v483_v6, %v467_v5  ;;  %v485_v9 = vld [vmem:[%s3220_s15 + $0xf8] sm:$0xff] }
  0x9c   : > { %2563 = vmatprep.subr.bf16.mxu1 %v2803_v10  ;;  %v466_v10 = vld [vmem:[%s3220_s15 + $0x60] sm:$0xff] }
  0x9e   : > { %2542 = vmatpush3.bf16.msra.mxu0 %v2804_v11  ;;  %v482_v11 = vld [vmem:[%s3220_s15 + $0xe0] sm:$0xff] }
  0x9f   : > { %2564 = vmatpush3.bf16.msra.mxu1 %v2805_v12  ;;  %2543 = vmatprep.subr.bf16.mxu0 %v2806_v13  ;;  %v501_v12 = vpack.c.bf16 %v485_v9, %v469_v7  ;;  %v498_v13 = vpack.c.bf16 %v482_v11, %v466_v10  ;;  %v452_v7 = vld [vmem:[#allocation2] sm:$0xff] }
  0xa0   : > { %2565 = vmatprep.subr.bf16.mxu1 %v2807_v14  ;;  %v468_v14 = vld [vmem:[%s3220_s15 + $0x70] sm:$0xff] }
  0xa2   : > { %2544 = vmatpush3.bf16.msra.mxu0 %v2808_v15  ;;  %v484_v15 = vld [vmem:[%s3220_s15 + $0xf0] sm:$0xff] }
  0xa3   : > { %2566 = vmatpush3.bf16.msra.mxu1 %v2809_v16  ;;  %2545 = vmatprep.subr.bf16.mxu0 %v2810_v17  ;;  %v500_v16 = vpack.c.bf16 %v484_v15, %v468_v14 }
  0xa4   : > { %2567 = vmatprep.subr.bf16.mxu1 %v2811_v18 }
  0xa6   : > { %2546 = vmatpush3.bf16.msra.mxu0 %v2812_v19 }
  0xa7   : > { %2568 = vmatpush3.bf16.msra.mxu1 %v2813_v20  ;;  %2547 = vmatprep.subr.bf16.mxu0 %v2814_v21 }
  0xa8   : > { %2569 = vmatprep.subr.bf16.mxu1 %v2815_v22 }
  0xaa   : > { %2548 = vmatpush3.bf16.msra.mxu0 %v2816_v23 }
  0xab   : > { %2570 = vmatpush3.bf16.msra.mxu1 %v2817_v24  ;;  %2577 = vmatprep.subr.bf16.mxu0 %v2818_v37 }
  0xac   : > { %2599 = vmatprep.subr.bf16.mxu1 %v2819_v38 }
  0xad   : > { %1723 = vmatmul.mubr.bf16.vlgmr.msra.gmra.mxu0 %v494_v35 }
  0xae   : > { %1764 = vmatmul.mubr.bf16.vlgmr.msra.gmra.mxu1 %v496_v36  ;;  %2578 = vmatpush3.bf16.msra.mxu0 %v2820_v39 }
  0xaf   : > { %2600 = vmatpush3.bf16.msra.mxu1 %v2821_v40  ;;  %2579 = vmatprep.subr.bf16.mxu0 %v2822_v41 }
  0xb0   : > { %2601 = vmatprep.subr.bf16.mxu1 %v2823_v42  ;;  %1804 = vmatprep.mubr.bf16.mxu0 %v499_v8 }
  0xb1   : > { %1845 = vmatprep.mubr.bf16.mxu1 %v501_v12 }
  0xb2   : > { %2580 = vmatpush3.bf16.msra.mxu0 %v2824_v43 }
  0xb3   : > { %2602 = vmatpush3.bf16.msra.mxu1 %v2825_v44  ;;  %2581 = vmatprep.subr.bf16.mxu0 %v2826_v45 }
  0xb4   : > { %2603 = vmatprep.subr.bf16.mxu1 %v2827_v46 }
  0xb6   : > { %2582 = vmatpush3.bf16.msra.mxu0 %v2828_v47 }
  0xb7   : > { %2604 = vmatpush3.bf16.msra.mxu1 %v2829_v48  ;;  %2583 = vmatprep.subr.bf16.mxu0 %v2830_v49 }
  0xb8   : > { %2605 = vmatprep.subr.bf16.mxu1 %v2831_v50 }
  0xba   : > { %2584 = vmatpush3.bf16.msra.mxu0 %v2832_v51 }
  0xbb   : > { %2606 = vmatpush3.bf16.msra.mxu1 %v2833_v52  ;;  %2585 = vmatprep.subr.bf16.mxu0 %v2834_v53 }
  0xbc   : > { %2607 = vmatprep.subr.bf16.mxu1 %v2835_v54 }
  0xbe   : > { %2586 = vmatpush3.bf16.msra.mxu0 %v2836_v55 }
  0xbf   : > { %2608 = vmatpush3.bf16.msra.mxu1 %v2837_v56  ;;  %2587 = vmatprep.subr.bf16.mxu0 %v2838_v57 }
  0xc0   : > { %2609 = vmatprep.subr.bf16.mxu1 %v2839_v58 }
  0xc2   : > { %2588 = vmatpush3.bf16.msra.mxu0 %v2840_v59 }
  0xc3   : > { %2610 = vmatpush3.bf16.msra.mxu1 %v2841_v60  ;;  %2589 = vmatprep.subr.bf16.mxu0 %v2842_v61 }
  0xc4   : > { %2611 = vmatprep.subr.bf16.mxu1 %v2843_v62 }
  0xc6   : > { %2590 = vmatpush3.bf16.msra.mxu0 %v2844_v63 }
  0xc7   : > { %2612 = vmatpush3.bf16.msra.mxu1 %v2845_v0  ;;  %2591 = vmatprep.subr.bf16.mxu0 %v2846_v1 }
  0xc8   : > { %2613 = vmatprep.subr.bf16.mxu1 %v2847_v2 }
  0xca   : > { %2592 = vmatpush3.bf16.msra.mxu0 %v2848_v3 }
  0xcb   : > { %2614 = vmatpush3.bf16.msra.mxu1 %v2849_v4 }
  0xcd   : > { %1805 = vmatmul.mubr.bf16.vlgmr.msra.gmra.mxu0 %v498_v13 }
  0xce   : > { %1846 = vmatmul.mubr.bf16.vlgmr.msra.gmra.mxu1 %v500_v16  ;;  %v453_v16 = vld [vmem:[#allocation2 + $0x8] sm:$0xff] }
 0x12d   : > { %v2461_v17 = vpop.f32.mrf.mxu0 }
 0x12e   : > { %v2483_v18 = vpop.f32.mrf.mxu1 }
 0x12f   : > { %v2462_v19 = vpop.f32.mrf.mxu0 }
 0x130   : > { %v2484_v20 = vpop.f32.mrf.mxu1  ;;  %v2463_v34 = vadd.f32 %v2462_v19, %v2461_v17 }
 0x131   : > { %v2464_v21 = vpop.f32.mrf.mxu0  ;;  %v2485_v35 = vadd.f32 %v2484_v20, %v2483_v18 }
 0x132   : > { %v2486_v22 = vpop.f32.mrf.mxu1 }
 0x133   : > { %v2465_v23 = vpop.f32.mrf.mxu0  ;;  %v1602_v39 = vadd.f32 %v2485_v35, %v2463_v34 }
 0x134   : > { %v2487_v25 = vpop.f32.mrf.mxu1  ;;  %v2466_v40 = vadd.f32 %v2465_v23, %v2464_v21 }
 0x135   : > { %v2488_v41 = vadd.f32 %v2487_v25, %v2486_v22 }
 0x137   : > { %v1605_v47 = vadd.f32 %v2488_v41, %v2466_v40 }
 0x14d   : > { %v2505_v24 = vpop.f32.mrf.mxu0 }
 0x14e   : > { %v2527_v26 = vpop.f32.mrf.mxu1 }
 0x14f   : > { %v2506_v27 = vpop.f32.mrf.mxu0 }
 0x150   : > { %v2528_v28 = vpop.f32.mrf.mxu1  ;;  %v2507_v38 = vadd.f32 %v2506_v27, %v2505_v24 }
 0x151   : > { %v2508_v29 = vpop.f32.mrf.mxu0  ;;  %v2529_v45 = vadd.f32 %v2528_v28, %v2527_v26 }
 0x152   : > { %v2530_v30 = vpop.f32.mrf.mxu1  ;;  %v1643_v44 = vadd.f32 %v2507_v38, %v1602_v39 }
 0x153   : > { %v2509_v31 = vpop.f32.mrf.mxu0 }
 0x154   : > { %v2531_v33 = vpop.f32.mrf.mxu1  ;;  %v2510_v46 = vadd.f32 %v2509_v31, %v2508_v29  ;;  %v1684_v51 = vadd.f32 %v2529_v45, %v1643_v44 }
 0x155   : > { %v2532_v53 = vadd.f32 %v2531_v33, %v2530_v30 }
 0x156   : > { %v1646_v52 = vadd.f32 %v2510_v46, %v1605_v47 }
 0x158   : > { %v1687_v59 = vadd.f32 %v2532_v53, %v1646_v52 }
 0x16d   : > { %v2549_v32 = vpop.f32.mrf.mxu0 }
 0x16e   : > { %v2571_v36 = vpop.f32.mrf.mxu1 }
 0x16f   : > { %v2550_v37 = vpop.f32.mrf.mxu0 }
 0x170   : > { %v2572_v42 = vpop.f32.mrf.mxu1  ;;  %v2551_v48 = vadd.f32 %v2550_v37, %v2549_v32 }
 0x171   : > { %v2552_v43 = vpop.f32.mrf.mxu0  ;;  %v2573_v55 = vadd.f32 %v2572_v42, %v2571_v36 }
 0x172   : > { %v2574_v49 = vpop.f32.mrf.mxu1  ;;  %v1725_v54 = vadd.f32 %v2551_v48, %v1684_v51 }
 0x173   : > { %v2553_v50 = vpop.f32.mrf.mxu0 }
 0x174   : > { %v2554_v56 = vadd.f32 %v2553_v50, %v2552_v43  ;;  %v2575_v57 = vpop.f32.mrf.mxu1  ;;  %v1766_v62 = vadd.f32 %v2573_v55, %v1725_v54 }
 0x175   : > { %v2576_v3 = vadd.f32 %v2575_v57, %v2574_v49 }
 0x176   : > { %v1728_v63 = vadd.f32 %v2554_v56, %v1687_v59 }
 0x178   : > { %v1769_v9 = vadd.f32 %v2576_v3, %v1728_v63 }
 0x18d   : > { %v2593_v58 = vpop.f32.mrf.mxu0 }
 0x18e   : > { %v2615_v60 = vpop.f32.mrf.mxu1 }
 0x18f   : > { %v2594_v61 = vpop.f32.mrf.mxu0 }
 0x190   : > { %v2595_v0 = vadd.f32 %v2594_v61, %v2593_v58  ;;  %v2616_v1 = vpop.f32.mrf.mxu1 }
 0x191   : > { %v2596_v2 = vpop.f32.mrf.mxu0  ;;  %v2617_v5 = vadd.f32 %v2616_v1, %v2615_v60 }
 0x192   : > { %v1807_v4 = vadd.f32 %v2595_v0, %v1766_v62  ;;  %v2618_v6 = vpop.f32.mrf.mxu1 }
 0x193   : > { %v2597_v8 = vpop.f32.mrf.mxu0 }
 0x194   : > { %v1848_v10 = vadd.f32 %v2617_v5, %v1807_v4  ;;  %v2598_v11 = vadd.f32 %v2597_v8, %v2596_v2  ;;  %v2619_v12 = vpop.f32.mrf.mxu1 }
 0x195   : > { %v2620_v15 = vadd.f32 %v2619_v12, %v2618_v6 }
 0x196   : > { %v1854_v13 = vadd.f32 %v1848_v10, %v452_v7  ;;  %v1810_v14 = vadd.f32 %v2598_v11, %v1769_v9 }
 0x198   : > { %1856 = vst [vmem:[#allocation2] sm:$0xff] %v1854_v13  ;;  %v1851_v17 = vadd.f32 %v2620_v15, %v1810_v14  ;;  %1861 = sbr.rel (%p2410_p6) target bundleno = 863 (0x35f), region = 83 }
 0x19a   : > { %v1855_v18 = vadd.f32 %v1851_v17, %v453_v16 }
 0x19c   : > { %1857 = vst [vmem:[#allocation2 + $0x8] sm:$0xff] %v1855_v18 }
 0x19d   : > { %v2850_v19 = vld [vmem:[%s3520_s3 + $0x38] sm:$0xff]   ;;  %v3028_v20 = vmov 0.0   ;;  %v2851_v21 = vld [vmem:[%s3520_s3 + $0x30] sm:$0xff]   ;;  %vm3029_vm0 = vmmov 0   ;;  %v2852_v22 = vld [vmem:[%s3520_s3 + $0x28] sm:$0xff]   ;;  %v3030_v49 = vmov 0   ;;  %v2009_v63 = vlaneseq }
 0x19e   : > { %2630 = vmatprep.subr.bf16.mxu0 %v3028_v20  ;;  %2646 = vmatprep.mubr.msk.bf16.mxu0 %vm3029_vm0, %v3028_v20  ;;  %v2853_v23 = vld [vmem:[%s3520_s3 + $0x20] sm:$0xff]   ;;  %v2858_v29 = vld [vmem:[%s3522_s5 + $0x74] ss:$8 sps:$4 sm:$0xff]   ;;  %v2860_v30 = vld [vmem:[%s3522_s5 + $0x70] ss:$8 sps:$4 sm:$0xff]  }
 0x19f   : > { %2631 = vmatpush3.bf16.msra.mxu0 %v2850_v19  ;;  %v1862_v24 = vld [vmem:[#allocation2] sm:$0xff]  ;;  %2099 = vmatprep.subr.bf16.mxu1 %v2858_v29  ;;  %v2854_v32 = vld [vmem:[%s3520_s3 + $0x18] sm:$0xff]   ;;  %v2855_v35 = vld [vmem:[%s3520_s3 + $0x10] sm:$0xff]   ;;  %v2010_v0 = vshrl.u32 %v2009_v63, 7 }
 0x1a0   : > { %2632 = vmatprep.subr.bf16.mxu0 %v3028_v20  ;;  %v2411_v26 = vld [vmem:[%s3519_s2] ss:$0 sm:$0xff]  ;;  %v2861_v31 = vld [vmem:[%s3522_s5 + $0x64] ss:$8 sps:$4 sm:$0xff]   ;;  %2100 = vmatpush1.bf16.msra.mxu1 %v2860_v30  ;;  %v2864_v34 = vld [vmem:[%s3522_s5 + $0x54] ss:$8 sps:$4 sm:$0xff]  }
 0x1a1   : > { %v1871_v27 = vadd.f32 %v2411_v26, %v1862_v24  ;;  %v2863_v33 = vld [vmem:[%s3522_s5 + $0x60] ss:$8 sps:$4 sm:$0xff]   ;;  %2101 = vmatprep.subr.bf16.mxu1 %v2861_v31  ;;  %v2866_v41 = vld [vmem:[%s3522_s5 + $0x50] ss:$8 sps:$4 sm:$0xff]   ;;  %v2867_v42 = vld [vmem:[%s3522_s5 + $0x44] ss:$8 sps:$4 sm:$0xff]   ;;  %2131 = vmatprep.mubr.bf16.mxu1 %v3030_v49 }
 0x1a2   : > { %v2856_v36 = vld [vmem:[%s3520_s3 + $0x8] sm:$0xff]   ;;  %v2857_v39 = vld [vmem:[%s3520_s3] sm:$0xff]   ;;  %v2870_v44 = vld [vmem:[%s3522_s5 + $0x34] ss:$8 sps:$4 sm:$0xff]   ;;  %v2011_v1 = vsub.s32 0, %v2010_v0  ;;  %v2015_v3 = vsub.s32 1, %v2010_v0 }
 0x1a3   : > { %2633 = vmatpush3.bf16.msra.mxu0 %v2851_v21  ;;  %v1863_v25 = vld [vmem:[#allocation2 + $0x8] sm:$0xff]  ;;  %2882 = vtanh.f32 %v1871_v27  ;;  %v2872_v45 = vld [vmem:[%s3522_s5 + $0x30] ss:$8 sps:$4 sm:$0xff]   ;;  %v2876_v48 = vld [vmem:[%s3522_s5 + $0x14] ss:$8 sps:$4 sm:$0xff]  }
 0x1a4   : > { %2634 = vmatprep.subr.bf16.mxu0 %v3028_v20  ;;  %v1872_v28 = vadd.f32 %v2411_v26, %v1863_v25  ;;  %2102 = vmatpush1.bf16.msra.mxu1 %v2863_v33  ;;  %v2869_v43 = vld [vmem:[%s3522_s5 + $0x40] ss:$8 sps:$4 sm:$0xff]   ;;  %v2873_v46 = vld [vmem:[%s3522_s5 + $0x24] ss:$8 sps:$4 sm:$0xff]   ;;  %v2878_v50 = vld [vmem:[%s3522_s5 + $0x10] ss:$8 sps:$4 sm:$0xff]  }
 0x1a5   : > { %2103 = vmatprep.subr.bf16.mxu1 %v2864_v34  ;;  %v2875_v47 = vld [vmem:[%s3522_s5 + $0x20] ss:$8 sps:$4 sm:$0xff]   ;;  %v2879_v51 = vld [vmem:[%s3522_s5 + $0x4] ss:$8 sps:$4 sm:$0xff]  }
 0x1a6   : > { %2884 = vtanh.f32 %v1872_v28  ;;  %v2881_v52 = vld [vmem:[%s3522_s5] ss:$8 sps:$4 sm:$0xff]  }
 0x1a7   : > { %2635 = vmatpush3.bf16.msra.mxu0 %v2852_v22  ;;  %v2412_v53 = vld [vmem:[%s3521_s4] ss:$0 sm:$0xff] }
 0x1a8   : > { %2636 = vmatprep.subr.bf16.mxu0 %v3028_v20  ;;  %2104 = vmatpush1.bf16.msra.mxu1 %v2866_v41  ;;  %v2007_v2 = vld [vmem:[%s3523_s6] sm:$0x3] }
 0x1a9   : > { %2105 = vmatprep.subr.bf16.mxu1 %v2867_v42  ;;  %v2012_v4 = vrot.slane %v2007_v2, %v2011_v1  ;;  %v2016_v5 = vrot.slane %v2007_v2, %v2015_v3 }
 0x1ab   : > { %2637 = vmatpush3.bf16.msra.mxu0 %v2853_v23 }
 0x1ac   : > { %2638 = vmatprep.subr.bf16.mxu0 %v3028_v20  ;;  %2106 = vmatpush1.bf16.msra.mxu1 %v2869_v43 }
 0x1ad   : > { %2107 = vmatprep.subr.bf16.mxu1 %v2870_v44 }
 0x1af   : > { %2639 = vmatpush3.bf16.msra.mxu0 %v2854_v32 }
 0x1b0   : > { %2640 = vmatprep.subr.bf16.mxu0 %v3028_v20  ;;  %v2883_v37 = vpop.eup %2882  ;;  %2108 = vmatpush1.bf16.msra.mxu1 %v2872_v45 }
 0x1b1   : > { %2109 = vmatprep.subr.bf16.mxu1 %v2873_v46 }
 0x1b3   : > { %2641 = vmatpush3.bf16.msra.mxu0 %v2855_v35  ;;  %v2885_v38 = vpop.eup %2884 }
 0x1b4   : > { %2642 = vmatprep.subr.bf16.mxu0 %v3028_v20  ;;  %v1875_v40 = vpack.c.bf16 %v2885_v38, %v2883_v37  ;;  %2110 = vmatpush1.bf16.msra.mxu1 %v2875_v47 }
 0x1b5   : > { %2111 = vmatprep.subr.bf16.mxu1 %v2876_v48 }
 0x1b7   : > { %2643 = vmatpush3.bf16.msra.mxu0 %v2856_v36 }
 0x1b8   : > { %2644 = vmatprep.subr.bf16.mxu0 %v3028_v20  ;;  %2112 = vmatpush1.bf16.msra.mxu1 %v2878_v50 }
 0x1b9   : > { %2113 = vmatprep.subr.bf16.mxu1 %v2879_v51 }
 0x1bb   : > { %2645 = vmatpush3.bf16.msra.mxu0 %v2857_v39 }
 0x1bc   : > { %2114 = vmatpush1.bf16.msra.mxu1 %v2881_v52 }
 0x1be   : > { %2647 = vmatmul.mubr.bf16.vlgmr.msra.gmra.mxu0 %v1875_v40 }
 0x27e   : > { %v1981_v54 = vpop.f32.mrf.mxu0 }
 0x27f   : > { %v1982_v55 = vadd.f32 %v2412_v53, %v1981_v54 }
 0x280   : > { %v2648_v56 = vpop.f32.mrf.mxu0 }
 0x281   : > { %2886 = vtanh.f32 %v1982_v55 }
 0x282   : > { %v1984_v57 = vpop.f32.mrf.mxu0 }
 0x283   : > { %v1985_v58 = vadd.f32 %v2412_v53, %v1984_v57 }
 0x284   : > { %v2649_v59 = vpop.f32.mrf.mxu0 }
 0x285   : > { %2888 = vtanh.f32 %v1985_v58 }
 0x28e   : > { %v2887_v60 = vpop.eup %2886 }
 0x292   : > { %v2889_v61 = vpop.eup %2888 }
 0x293   : > { %v1990_v62 = vpack.c.bf16 %v2889_v61, %v2887_v60 }
 0x295   : > { %2132 = vmatmul.mubr.bf16.vlgmr.msra.gmra.mxu1 %v1990_v62 }
 0x355   : > { %v2133_v6 = vpop.f32.mrf.mxu1 }
 0x356   : > { %v2134_v7 = vadd.f32 %v2133_v6, %v2012_v4 }
 0x357   : > { %v2135_v8 = vpop.f32.mrf.mxu1 }
 0x358   : > { %2142 = vst [vmem:[#allocation7] sm:$0xff] %v2134_v7  ;;  %v2136_v9 = vadd.f32 %v2135_v8, %v2016_v5 }
 0x359   : > { %v2137_v10 = vpop.f32.mrf.mxu1 }
 0x35a   : > { %2144 = vst [vmem:[#allocation8] sm:$0xff] %v2136_v9  ;;  %v2138_v11 = vadd.f32 %v2137_v10, %v2012_v4 }
 0x35b   : > { %v2139_v12 = vpop.f32.mrf.mxu1 }
 0x35c   : > { %2143 = vst [vmem:[#allocation7 + $0x8] sm:$0xff] %v2138_v11  ;;  %v2140_v13 = vadd.f32 %v2139_v12, %v2016_v5 }
 0x35e   : > { %2145 = vst [vmem:[#allocation8 + $0x8] sm:$0xff] %v2140_v13 }
 0x35f PF: > { %s3529_s30 = sadd.s32 4294967295, %s3022_s10   ;;  %s3031_s13 = smov [#allocation7]  }
 0x360   : > { %p3473_p7 = scmp.eq.s32.totalorder %s3529_s30, 1  ;;  %s2155_s26 = sshll.u32 %s3031_s13, 4  ;;  %s2156_s26 = int_to_ptr.vmem [resolvable:$true] %s2155_s26 }
 0x361   : > { %s2916_s25 = scalar_lea.vmem %s2156_s26, 256  ;;  %p2923_p11 = scmp.lt.s32.totalorder %s2156_s26, %s2156_s26 }
 0x362   : > { %p2917_p8 = scmp.ne.s32.totalorder %s2156_s26, %s2916_s25  ;;  %p2924_p12 = scmp.lt.s32.totalorder %s2916_s25, %s2916_s25 }
 0x364   : > { %p2918_p9 = pnand %p2917_p8, %p3473_p7  ;;  %p2925_p13 = por %p2924_p12, %p2923_p11 }
 0x366   : > { %p2919_p10 = pneg %p2918_p9 }
 0x368   : > { %p2926_p0 = pnand %p2925_p13, %p2919_p10 }
 0x36a   : > { %2929 = shalt.err (!%p2926_p0)
}
 0x36b   : > { %s3032_s27 = smov 128   ;;  %s3033_s11 = smov 8  }
 0x36c   : > { %2653 = dma.vmem_to_hbm [thread:$0]  (%p3473_p7), %s2156_s26, 256, %s3524_s7, [#allocation6], %s3032_s27, %s3032_s27, %s3033_s11  }
 0x36d   : > { %s3034_s22 = smov [#allocation8]  }
 0x36e   : > { %s2171_s14 = sshll.u32 %s3034_s22, 4  ;;  %s2172_s14 = int_to_ptr.vmem [resolvable:$true] %s2171_s14 }
 0x36f   : > { %s2940_s16 = scalar_lea.vmem %s2172_s14, 256  ;;  %p2947_p5 = scmp.lt.s32.totalorder %s2172_s14, %s2172_s14 }
 0x370   : > { %p2941_p1 = scmp.ne.s32.totalorder %s2172_s14, %s2940_s16  ;;  %p2948_p3 = scmp.lt.s32.totalorder %s2940_s16, %s2940_s16 }
 0x372   : > { %p2942_p2 = pnand %p2941_p1, %p3473_p7  ;;  %p2949_p6 = por %p2948_p3, %p2947_p5 }
 0x374   : > { %p2943_p4 = pneg %p2942_p2 }
 0x376   : > { %p2950_p8 = pnand %p2949_p6, %p2943_p4 }
 0x378   : > { %2953 = shalt.err (!%p2950_p8)
}
 0x379   : > { %2655 = dma.vmem_to_hbm [thread:$0]  (%p3473_p7), %s2172_s14, 256, %s3525_s8, [#allocation9], %s3032_s27, %s3032_s27, %s3033_s11  }
 0x37a   : > { %2993 = dma.done.wait (%p3473_p7), [#allocation6], 256  }
 0x37b   : > { %2995 = vsyncadd (%p3473_p7), [#allocation6], 4294967040 }
 0x37c   : > { %2997 = dma.done.wait (%p3473_p7), [#allocation9], 256  }
 0x37d   : > { %2999 = vsyncadd (%p3473_p7), [#allocation9], 4294967040 }
 0x37e PF: > { %s24_s10 = sadd.s32 1, %s3022_s10   ;;  %s3531_s27 = smov %s3006_s28 }
 0x37f   : > { %p21_p9 = scmp.ge.s32.totalorder %s24_s10, 4   ;;  %s3532_s28 = smov %s3010_s29 }
 0x380   : > { %s3533_s29 = smov %s3130_s17  ;;  %s3534_s30 = smov %s3018_s9 }
 0x381   : > { %s3535_s9 = smov %s3537_s12  ;;  %23 = sbr.rel (!%p21_p9) target bundleno = 6 (0x6), region = 134 }
 0x386   :  { %2191 = vsyncpa [#allocation5], 1 }
 0x387   :  { %2193 = vsyncpa [#allocation5 + $0x1], 1 }
 0x388   :  { %2194 = vsyncpa [#allocation6], 1 }
 0x389   :  { %2196 = vsyncpa [#allocation6 + $0x1], 1 }
 0x38a   :  { %2197 = vsyncpa [#allocation9], 1 }

</bundles_post_ra>
